<compile_context>
chip_gen: v5e
topology: v5e:2x2
jax: 0.10.0
libtpu: 0.0.40
codegen_flags: <defaults>
</compile_context>

<pallas_src>
import functools

import jax
import jax.numpy as jnp
from jax import lax
from jax.experimental import pallas as pl
from jax.experimental.pallas import tpu as pltpu


# Acklam's rational approximation of the standard normal inverse CDF.
_A = (-3.969683028665376e+01, 2.209460984245205e+02, -2.759285104469687e+02,
      1.383577518672690e+02, -3.066479806614716e+01, 2.506628277459239e+00)
_B = (-5.447609879822406e+01, 1.615858368580409e+02, -1.556989798598866e+02,
      6.680131188771972e+01, -1.328068155288572e+01)
_C = (-7.784894002430293e-03, -3.223964580411365e-01, -2.400758277161838e+00,
      -2.549732539343734e+00, 4.374664141464968e+00, 2.938163982698783e+00)
_D = (7.784695709041462e-03, 3.224671290700398e-01, 2.445134137142996e+00,
      3.754408661907416e+00)
_P_LOW = 0.02425


def _inv_norm_cdf(p):
    """Standard-normal inverse CDF (Acklam rational polynomials), f32, p in (0,1)."""
    # Central region: mostly VPU FMAs.
    q = p - 0.5
    r = q * q
    num_c = ((((_A[0] * r + _A[1]) * r + _A[2]) * r + _A[3]) * r + _A[4]) * r + _A[5]
    den_c = ((((_B[0] * r + _B[1]) * r + _B[2]) * r + _B[3]) * r + _B[4]) * r + 1.0
    z_central = q * num_c / den_c

    # Tail region via symmetry: evaluate at min(p, 1-p), flip sign for upper tail.
    pt = jnp.minimum(p, 1.0 - p)
    t = jnp.sqrt(-2.0 * jnp.log(pt))
    num_t = ((((_C[0] * t + _C[1]) * t + _C[2]) * t + _C[3]) * t + _C[4]) * t + _C[5]
    den_t = (((_D[0] * t + _D[1]) * t + _D[2]) * t + _D[3]) * t + 1.0
    z_tail = num_t / den_t                         # lower-tail (negative) value
    z_tail = jnp.where(p > 0.5, -z_tail, z_tail)

    return jnp.where(pt < _P_LOW, z_tail, z_central)


def _gaussian_noise_kernel(x_ref, bits_ref, o_ref, *, sigma):
    bits = bits_ref[...]
    # uint32 -> uniform in (0, 1): keep 23 mantissa bits, OR in the exponent of
    # 1.0, bitcast to f32 in [1, 2), shift to [0, 1), nudge off 0 by 2^-24.
    mant = (bits >> 9) | jnp.uint32(0x3F800000)
    u = lax.bitcast_convert_type(mant, jnp.float32) - 1.0
    p = u + jnp.float32(2.0 ** -24)

    z = _inv_norm_cdf(p)                           # N(0, 1), |z| <= ~5.5 by construction

    x = x_ref[...].astype(jnp.float32)
    o_ref[...] = (x * (1.0 + jnp.float32(sigma) * z)).astype(o_ref.dtype)


def _round_up(n, m):
    return (n + m - 1) // m * m


def gaussian_noise(x, key, *, sigma=0.1, training=True, is_relative_detach=False):
    """JAX/Pallas equivalent of GaussianNoise.forward.

    `is_relative_detach` only changes gradient flow in PyTorch (detach on the
    scale); forward values are identical, so it is ignored here.
    """
    del is_relative_detach  # forward values unaffected
    if (not training) or sigma == 0:
        return x

    orig_shape = x.shape
    orig_dtype = x.dtype
    total = x.size

    LANE = 512                                     # lane-dense output, multiple of 128
    rows = pl.cdiv(total, LANE)
    tile_rows = min(512, _round_up(rows, 8))       # sublane multiple of 8; <=1 MiB/buffer
    rows_padded = _round_up(rows, tile_rows)       # no partial (masked-store) tiles
    padded = rows_padded * LANE

    x_flat = x.reshape(-1)
    if padded != total:
        x_flat = jnp.pad(x_flat, (0, padded - total))
    x2 = x_flat.reshape(rows_padded, LANE)

    # One 32-bit random word per output element (standard JAX PRNG).
    bits = jax.random.bits(key, (rows_padded, LANE), dtype=jnp.uint32)

    itemsize = jnp.dtype(orig_dtype).itemsize
    out2 = pl.pallas_call(
        functools.partial(_gaussian_noise_kernel, sigma=float(sigma)),
        out_shape=jax.ShapeDtypeStruct((rows_padded, LANE), orig_dtype),
        grid=(rows_padded // tile_rows,),
        in_specs=[
            pl.BlockSpec((tile_rows, LANE), lambda i: (i, 0)),   # x tile
            pl.BlockSpec((tile_rows, LANE), lambda i: (i, 0)),   # random-bits tile
        ],
        out_specs=pl.BlockSpec((tile_rows, LANE), lambda i: (i, 0)),
        compiler_params=pltpu.CompilerParams(
            dimension_semantics=("parallel",)),
        cost_estimate=pl.CostEstimate(
            flops=40 * padded,                     # polynomial FMAs + fuse
            transcendentals=2 * padded,            # log + sqrt per element
            bytes_accessed=(2 * itemsize + 4) * padded),
    )(x2, bits)

    return out2.reshape(-1)[:total].reshape(orig_shape)


if __name__ == "__main__":
    key = jax.random.PRNGKey(0)
    k_x, k_noise = jax.random.split(key)
    x = jax.random.normal(k_x, (2, 4, 16, 16), dtype=jnp.float32)  # NCHW

    y = gaussian_noise(x, k_noise, sigma=0.1, training=True)
    y = jax.block_until_ready(y)

    # Shape/dtype preserved; multiplicative noise is nonzero and bounded.
    assert y.shape == x.shape and y.dtype == x.dtype
    diff = jnp.abs(y - x)
    assert float(jnp.max(diff)) > 0.0
    # noise term = sigma * x * z with |z| <= ~5.5 by construction (clamped uniform)
    assert bool(jnp.all(diff <= 0.1 * 8.0 * jnp.abs(x) + 1e-6))

    # Eval mode / sigma == 0 are identity.
    y_eval = jax.block_until_ready(gaussian_noise(x, k_noise, training=False))
    assert bool(jnp.all(y_eval == x))
    y_zero = jax.block_until_ready(gaussian_noise(x, k_noise, sigma=0.0))
    assert bool(jnp.all(y_zero == x))

    print("KERNEL_OK")
</pallas_src>

<mosaic_0001>
module attributes {stable_mosaic.version = 11 : i64} {
  func.func @_gaussian_noise_kernel(%arg0: i32, %arg1: memref<8x512xf32, #tpu.memory_space<vmem>>, %arg2: memref<8x512xi32, #tpu.memory_space<vmem>>, %arg3: memref<8x512xf32, #tpu.memory_space<vmem>>) attributes {dimension_semantics = [#tpu.dimension_semantics<parallel>], iteration_bounds = array<i64: 1>, scalar_prefetch = 0 : i64, scratch_operands = 0 : i64, tpu.core_type = #tpu.core_type<tc>, window_params = [{transform_indices = @transform_0, window_bounds = array<i64: 8, 512>}, {transform_indices = @transform_1, window_bounds = array<i64: 8, 512>}, {transform_indices = @transform_2, window_bounds = array<i64: 8, 512>}]} {
    %c0 = arith.constant 0 : index
    %c0_0 = arith.constant 0 : index
    %0 = vector.load %arg2[%c0, %c0_0] : memref<8x512xi32, #tpu.memory_space<vmem>>, vector<8x512xi32>
    %c9_i32 = arith.constant 9 : i32
    %1 = vector.broadcast %c9_i32 : i32 to vector<8x512xi32>
    %2 = arith.shrui %0, %1 : vector<8x512xi32>
    %c1065353216_i32 = arith.constant 1065353216 : i32
    %3 = vector.broadcast %c1065353216_i32 : i32 to vector<8x512xi32>
    %4 = arith.ori %2, %3 : vector<8x512xi32>
    %5 = tpu.bitcast %4 : vector<8x512xi32> -> vector<8x512xf32>
    %cst = arith.constant 1.000000e+00 : f32
    %6 = vector.broadcast %cst : f32 to vector<8x512xf32>
    %7 = arith.subf %5, %6 : vector<8x512xf32>
    %cst_1 = arith.constant 5.96046448E-8 : f32
    %8 = vector.broadcast %cst_1 : f32 to vector<8x512xf32>
    %9 = arith.addf %7, %8 : vector<8x512xf32>
    %cst_2 = arith.constant 5.000000e-01 : f32
    %10 = vector.broadcast %cst_2 : f32 to vector<8x512xf32>
    %11 = arith.subf %9, %10 : vector<8x512xf32>
    %12 = arith.mulf %11, %11 : vector<8x512xf32>
    %cst_3 = arith.constant -39.6968307 : f32
    %13 = vector.broadcast %cst_3 : f32 to vector<8x512xf32>
    %14 = arith.mulf %13, %12 : vector<8x512xf32>
    %cst_4 = arith.constant 220.946106 : f32
    %15 = vector.broadcast %cst_4 : f32 to vector<8x512xf32>
    %16 = arith.addf %14, %15 : vector<8x512xf32>
    %17 = arith.mulf %16, %12 : vector<8x512xf32>
    %cst_5 = arith.constant -275.928497 : f32
    %18 = vector.broadcast %cst_5 : f32 to vector<8x512xf32>
    %19 = arith.addf %17, %18 : vector<8x512xf32>
    %20 = arith.mulf %19, %12 : vector<8x512xf32>
    %cst_6 = arith.constant 138.357758 : f32
    %21 = vector.broadcast %cst_6 : f32 to vector<8x512xf32>
    %22 = arith.addf %20, %21 : vector<8x512xf32>
    %23 = arith.mulf %22, %12 : vector<8x512xf32>
    %cst_7 = arith.constant -30.6647987 : f32
    %24 = vector.broadcast %cst_7 : f32 to vector<8x512xf32>
    %25 = arith.addf %23, %24 : vector<8x512xf32>
    %26 = arith.mulf %25, %12 : vector<8x512xf32>
    %cst_8 = arith.constant 2.50662827 : f32
    %27 = vector.broadcast %cst_8 : f32 to vector<8x512xf32>
    %28 = arith.addf %26, %27 : vector<8x512xf32>
    %cst_9 = arith.constant -54.4760971 : f32
    %29 = vector.broadcast %cst_9 : f32 to vector<8x512xf32>
    %30 = arith.mulf %29, %12 : vector<8x512xf32>
    %cst_10 = arith.constant 161.585831 : f32
    %31 = vector.broadcast %cst_10 : f32 to vector<8x512xf32>
    %32 = arith.addf %30, %31 : vector<8x512xf32>
    %33 = arith.mulf %32, %12 : vector<8x512xf32>
    %cst_11 = arith.constant -155.698975 : f32
    %34 = vector.broadcast %cst_11 : f32 to vector<8x512xf32>
    %35 = arith.addf %33, %34 : vector<8x512xf32>
    %36 = arith.mulf %35, %12 : vector<8x512xf32>
    %cst_12 = arith.constant 66.8013153 : f32
    %37 = vector.broadcast %cst_12 : f32 to vector<8x512xf32>
    %38 = arith.addf %36, %37 : vector<8x512xf32>
    %39 = arith.mulf %38, %12 : vector<8x512xf32>
    %cst_13 = arith.constant -13.2806816 : f32
    %40 = vector.broadcast %cst_13 : f32 to vector<8x512xf32>
    %41 = arith.addf %39, %40 : vector<8x512xf32>
    %42 = arith.mulf %41, %12 : vector<8x512xf32>
    %cst_14 = arith.constant 1.000000e+00 : f32
    %43 = vector.broadcast %cst_14 : f32 to vector<8x512xf32>
    %44 = arith.addf %42, %43 : vector<8x512xf32>
    %45 = arith.mulf %11, %28 : vector<8x512xf32>
    %46 = arith.divf %45, %44 : vector<8x512xf32>
    %cst_15 = arith.constant 1.000000e+00 : f32
    %47 = vector.broadcast %cst_15 : f32 to vector<8x512xf32>
    %48 = arith.subf %47, %9 : vector<8x512xf32>
    %49 = arith.minimumf %9, %48 : vector<8x512xf32>
    %50 = math.log %49 : vector<8x512xf32>
    %cst_16 = arith.constant -2.000000e+00 : f32
    %51 = vector.broadcast %cst_16 : f32 to vector<8x512xf32>
    %52 = arith.mulf %51, %50 : vector<8x512xf32>
    %53 = math.sqrt %52 : vector<8x512xf32>
    %cst_17 = arith.constant -0.0077848942 : f32
    %54 = vector.broadcast %cst_17 : f32 to vector<8x512xf32>
    %55 = arith.mulf %54, %53 : vector<8x512xf32>
    %cst_18 = arith.constant -0.322396457 : f32
    %56 = vector.broadcast %cst_18 : f32 to vector<8x512xf32>
    %57 = arith.addf %55, %56 : vector<8x512xf32>
    %58 = arith.mulf %57, %53 : vector<8x512xf32>
    %cst_19 = arith.constant -2.40075827 : f32
    %59 = vector.broadcast %cst_19 : f32 to vector<8x512xf32>
    %60 = arith.addf %58, %59 : vector<8x512xf32>
    %61 = arith.mulf %60, %53 : vector<8x512xf32>
    %cst_20 = arith.constant -2.54973245 : f32
    %62 = vector.broadcast %cst_20 : f32 to vector<8x512xf32>
    %63 = arith.addf %61, %62 : vector<8x512xf32>
    %64 = arith.mulf %63, %53 : vector<8x512xf32>
    %cst_21 = arith.constant 4.37466431 : f32
    %65 = vector.broadcast %cst_21 : f32 to vector<8x512xf32>
    %66 = arith.addf %64, %65 : vector<8x512xf32>
    %67 = arith.mulf %66, %53 : vector<8x512xf32>
    %cst_22 = arith.constant 2.938164 : f32
    %68 = vector.broadcast %cst_22 : f32 to vector<8x512xf32>
    %69 = arith.addf %67, %68 : vector<8x512xf32>
    %cst_23 = arith.constant 0.00778469583 : f32
    %70 = vector.broadcast %cst_23 : f32 to vector<8x512xf32>
    %71 = arith.mulf %70, %53 : vector<8x512xf32>
    %cst_24 = arith.constant 0.322467119 : f32
    %72 = vector.broadcast %cst_24 : f32 to vector<8x512xf32>
    %73 = arith.addf %71, %72 : vector<8x512xf32>
    %74 = arith.mulf %73, %53 : vector<8x512xf32>
    %cst_25 = arith.constant 2.44513416 : f32
    %75 = vector.broadcast %cst_25 : f32 to vector<8x512xf32>
    %76 = arith.addf %74, %75 : vector<8x512xf32>
    %77 = arith.mulf %76, %53 : vector<8x512xf32>
    %cst_26 = arith.constant 3.7544086 : f32
    %78 = vector.broadcast %cst_26 : f32 to vector<8x512xf32>
    %79 = arith.addf %77, %78 : vector<8x512xf32>
    %80 = arith.mulf %79, %53 : vector<8x512xf32>
    %cst_27 = arith.constant 1.000000e+00 : f32
    %81 = vector.broadcast %cst_27 : f32 to vector<8x512xf32>
    %82 = arith.addf %80, %81 : vector<8x512xf32>
    %83 = arith.divf %69, %82 : vector<8x512xf32>
    %cst_28 = arith.constant 5.000000e-01 : f32
    %84 = vector.broadcast %cst_28 : f32 to vector<8x512xf32>
    %85 = arith.cmpf ogt, %9, %84 : vector<8x512xf32>
    %cst_29 = arith.constant 0.000000e+00 : f32
    %86 = vector.broadcast %cst_29 : f32 to vector<8x512xf32>
    %87 = arith.subf %86, %83 : vector<8x512xf32>
    %88 = arith.select %85, %87, %83 : vector<8x512xi1>, vector<8x512xf32>
    %cst_30 = arith.constant 2.425000e-02 : f32
    %89 = vector.broadcast %cst_30 : f32 to vector<8x512xf32>
    %90 = arith.cmpf olt, %49, %89 : vector<8x512xf32>
    %91 = arith.select %90, %88, %46 : vector<8x512xi1>, vector<8x512xf32>
    %c0_31 = arith.constant 0 : index
    %c0_32 = arith.constant 0 : index
    %92 = vector.load %arg1[%c0_31, %c0_32] : memref<8x512xf32, #tpu.memory_space<vmem>>, vector<8x512xf32>
    %cst_33 = arith.constant 1.000000e-01 : f32
    %93 = vector.broadcast %cst_33 : f32 to vector<8x512xf32>
    %94 = arith.mulf %93, %91 : vector<8x512xf32>
    %cst_34 = arith.constant 1.000000e+00 : f32
    %95 = vector.broadcast %cst_34 : f32 to vector<8x512xf32>
    %96 = arith.addf %95, %94 : vector<8x512xf32>
    %97 = arith.mulf %92, %96 : vector<8x512xf32>
    %c0_35 = arith.constant 0 : index
    %c0_36 = arith.constant 0 : index
    %98 = vector.load %arg3[%c0_35, %c0_36] : memref<8x512xf32, #tpu.memory_space<vmem>>, vector<8x512xf32>
    tpu.vector_store %arg3[%c0_35, %c0_36], %97 {strides = array<i32>} : memref<8x512xf32, #tpu.memory_space<vmem>>, vector<8x512xf32>,
    return
  }
  func.func @transform_0(%arg0: i32) -> (i32, i32) {
    %c0_i32 = arith.constant 0 : i32
    %c0_i32_0 = arith.constant 0 : i32
    return %arg0, %c0_i32 : i32, i32
  }
  func.func @transform_1(%arg0: i32) -> (i32, i32) {
    %c0_i32 = arith.constant 0 : i32
    %c0_i32_0 = arith.constant 0 : i32
    return %arg0, %c0_i32 : i32, i32
  }
  func.func @transform_2(%arg0: i32) -> (i32, i32) {
    %c0_i32 = arith.constant 0 : i32
    %c0_i32_0 = arith.constant 0 : i32
    return %arg0, %c0_i32 : i32, i32
  }
}

</mosaic_0001>

<bundles_post_ra>
// kernel: tpu_custom_call.1
= control target key start
LH: loop header
LB: loop body
LE: loop exit
PB: predicated region body
PF: predicated region fallthrough
CT: control target
= control target key end

     0   :  { %7 = vsyncpa [#allocation3], 0  ;;  %s1090_s0 = inlined_call_operand.hbm [shape: f32[8,512], index: 0, kind: input, shape index: {}]   ;;  %s1091_s1 = inlined_call_operand.hbm [shape: u32[8,512], index: 1, kind: input, shape index: {}]   ;;  %s1092_s2 = inlined_call_operand.hbm [shape: f32[8,512], index: 2, kind: output, shape index: {}]  }
   0x1   :  { %8 = vsyncpa [#allocation6], 0 }
   0x2   :  { %9 = vsyncpa [#allocation4], 0  ;;  %s15_s11 = sshll.u32 %s1090_s0, 4  ;;  %s595_s12 = smov [#allocation2]   ;;  %s16_s11 = int_to_ptr.hbm [resolvable:$true] %s15_s11 }
   0x3   :  { %s17_s13 = sshll.u32 %s595_s12, 4  ;;  %s26_s16 = sshll.u32 %s1091_s1, 4  ;;  %s18_s13 = int_to_ptr.vmem [resolvable:$true] %s17_s13  ;;  %s27_s16 = int_to_ptr.hbm [resolvable:$true] %s26_s16 }
   0x4   :  { %20 = dma.hbm_to_vmem [thread:$0]  %s16_s11, 512, %s18_s13, [#allocation3]  }
   0x5   :  { %s596_s17 = smov [#allocation5]  }
   0x6   :  { %s28_s18 = sshll.u32 %s596_s17, 4  ;;  %s29_s18 = int_to_ptr.vmem [resolvable:$true] %s28_s18 }
   0x7   :  { %31 = dma.hbm_to_vmem [thread:$0]  %s27_s16, 512, %s29_s18, [#allocation6]  }
   0x8   :  { %589 = dma.done.wait [#allocation3], 512  }
   0x9   :  { %590 = vsyncadd [#allocation3], 4294966784 }
   0xa   :  { %591 = dma.done.wait [#allocation6], 512  }
   0xb   :  { %592 = vsyncadd [#allocation6], 4294966784  ;;  %v40_v0 = vld [vmem:[#allocation5] sm:$0xff]  ;;  %v41_v1 = vld [vmem:[#allocation5 + $0x8] sm:$0xff]  ;;  %s597_s0 = smov [#allocation7]   ;;  %s463_s21 = sshll.u32 %s1092_s2, 4  ;;  %s464_s21 = int_to_ptr.hbm [resolvable:$true] %s463_s21 }
   0xc   :  { %v42_v2 = vld [vmem:[#allocation5 + $0x10] sm:$0xff]  ;;  %v43_v3 = vld [vmem:[#allocation5 + $0x18] sm:$0xff]  ;;  %v44_v4 = vshrl.u32 %v40_v0, 9  ;;  %v45_v5 = vshrl.u32 %v41_v1, 9  ;;  %s461_s1 = sshll.u32 %s597_s0, 4  ;;  %s462_s1 = int_to_ptr.vmem [resolvable:$true] %s461_s1 }
   0xd   :  { %v46_v6 = vshrl.u32 %v42_v2, 9  ;;  %v47_v7 = vshrl.u32 %v43_v3, 9 }
   0xe   :  { %v48_v8 = vor.u32 1065353216, %v44_v4  ;;  %v49_v9 = vor.u32 1065353216, %v45_v5 }
   0xf   :  { %v50_v10 = vor.u32 1065353216, %v46_v6  ;;  %v51_v11 = vor.u32 1065353216, %v47_v7 }
  0x10   :  { %v474_v12 = vadd.f32 -1.0, %v48_v8  ;;  %v475_v13 = vadd.f32 -1.0, %v49_v9 }
  0x11   :  { %v476_v14 = vadd.f32 -1.0, %v50_v10  ;;  %v477_v15 = vadd.f32 -1.0, %v51_v11 }
  0x12   :  { %v619_v16 = vadd.f32 5.9604645e-08, %v474_v12  ;;  %v621_v17 = vadd.f32 5.9604645e-08, %v475_v13 }
  0x13   :  { %v623_v18 = vadd.f32 5.9604645e-08, %v476_v14  ;;  %v625_v19 = vadd.f32 5.9604645e-08, %v477_v15 }
  0x14   :  { %v628_v20 = vadd.f32 -0.5, %v619_v16  ;;  %v631_v21 = vadd.f32 -0.5, %v621_v17  ;;  %v216_v51 = vsub.f32 1.0, %v619_v16  ;;  %v217_v52 = vsub.f32 1.0, %v621_v17 }
  0x15   :  { %v634_v22 = vadd.f32 -0.5, %v623_v18  ;;  %v637_v23 = vadd.f32 -0.5, %v625_v19  ;;  %v218_v0 = vsub.f32 1.0, %v623_v18  ;;  %v219_v2 = vsub.f32 1.0, %v625_v19 }
  0x16   :  { %v641_v24 = vmul.f32 %v628_v20, %v628_v20  ;;  %v645_v25 = vmul.f32 %v631_v21, %v631_v21  ;;  %v680_v3 = vmin.f32 %v619_v16, %v216_v51  ;;  %v683_v7 = vmin.f32 %v621_v17, %v217_v52 }
  0x17   :  { %v649_v26 = vmul.f32 %v634_v22, %v634_v22  ;;  %v653_v27 = vmul.f32 %v637_v23, %v637_v23  ;;  %v691_v15 = vmin.f32 %v623_v18, %v218_v0 }
  0x18   :  { %v72_v28 = vmul.f32 -39.69683, %v641_v24  ;;  %v73_v29 = vmul.f32 -39.69683, %v645_v25  ;;  %v112_v31 = vmul.f32 -54.476097, %v641_v24  ;;  %485 = vlog2.f32 %v680_v3 }
  0x19   :  { %v74_v30 = vmul.f32 -39.69683, %v649_v26  ;;  %v113_v32 = vmul.f32 -54.476097, %v645_v25  ;;  %v75_v33 = vmul.f32 -39.69683, %v653_v27  ;;  %487 = vlog2.f32 %v683_v7 }
  0x1a   :  { %v76_v34 = vadd.f32 220.9461, %v72_v28  ;;  %v77_v35 = vadd.f32 220.9461, %v73_v29  ;;  %v114_v36 = vmul.f32 -54.476097, %v649_v26  ;;  %489 = vlog2.f32 %v691_v15 }
  0x1b   :  { %v115_v37 = vmul.f32 -54.476097, %v653_v27  ;;  %v78_v38 = vadd.f32 220.9461, %v74_v30  ;;  %v116_v39 = vadd.f32 161.58583, %v112_v31  ;;  %v696_v31 = vmin.f32 %v625_v19, %v219_v2 }
  0x1c   :  { %v117_v40 = vadd.f32 161.58583, %v113_v32  ;;  %v118_v41 = vadd.f32 161.58583, %v114_v36  ;;  %v79_v43 = vadd.f32 220.9461, %v75_v33  ;;  %v80_v44 = vmul.f32 %v76_v34, %v641_v24 }
  0x1d   :  { %v119_v42 = vadd.f32 161.58583, %v115_v37  ;;  %v81_v45 = vmul.f32 %v77_v35, %v645_v25  ;;  %v120_v46 = vmul.f32 %v116_v39, %v641_v24  ;;  %v82_v53 = vmul.f32 %v78_v38, %v649_v26 }
  0x1e   :  { %v121_v47 = vmul.f32 %v117_v40, %v645_v25  ;;  %v122_v48 = vmul.f32 %v118_v41, %v649_v26  ;;  %v83_v57 = vmul.f32 %v79_v43, %v653_v27  ;;  %v84_v58 = vadd.f32 -275.9285, %v80_v44  ;;  %v486_v40 = vpop.eup %485 }
  0x1f   :  { %v123_v49 = vmul.f32 %v119_v42, %v653_v27  ;;  %v124_v50 = vadd.f32 -155.69897, %v120_v46  ;;  %v85_v59 = vadd.f32 -275.9285, %v81_v45  ;;  %v86_v4 = vadd.f32 -275.9285, %v82_v53  ;;  %v488_v45 = vpop.eup %487 }
  0x20   :  { %v125_v54 = vadd.f32 -155.69897, %v121_v47  ;;  %v126_v55 = vadd.f32 -155.69897, %v122_v48  ;;  %v87_v8 = vadd.f32 -275.9285, %v83_v57  ;;  %v88_v9 = vmul.f32 %v84_v58, %v641_v24  ;;  %v490_v48 = vpop.eup %489 }
  0x21   :  { %v127_v56 = vadd.f32 -155.69897, %v123_v49  ;;  %v128_v60 = vmul.f32 %v124_v50, %v641_v24  ;;  %v89_v10 = vmul.f32 %v85_v59, %v645_v25  ;;  %v90_v29 = vmul.f32 %v86_v4, %v649_v26 }
  0x22   :  { %v129_v61 = vmul.f32 %v125_v54, %v645_v25  ;;  %v130_v62 = vmul.f32 %v126_v55, %v649_v26  ;;  %v91_v32 = vmul.f32 %v87_v8, %v653_v27  ;;  %v92_v33 = vadd.f32 138.35776, %v88_v9 }
  0x23   :  { %v131_v63 = vmul.f32 %v127_v56, %v653_v27  ;;  %v132_v1 = vadd.f32 66.801315, %v128_v60  ;;  %v93_v34 = vadd.f32 138.35776, %v89_v10  ;;  %v94_v38 = vadd.f32 138.35776, %v90_v29 }
  0x24   :  { %v133_v5 = vadd.f32 66.801315, %v129_v61  ;;  %v134_v6 = vadd.f32 66.801315, %v130_v62  ;;  %491 = vlog2.f32 %v696_v31  ;;  %v95_v41 = vadd.f32 138.35776, %v91_v32 }
  0x25   :  { %v136_v11 = vmul.f32 %v132_v1, %v641_v24  ;;  %v135_v12 = vadd.f32 66.801315, %v131_v63  ;;  %v96_v42 = vmul.f32 %v92_v33, %v641_v24  ;;  %v97_v43 = vmul.f32 %v93_v34, %v645_v25 }
  0x26   :  { %v137_v13 = vmul.f32 %v133_v5, %v645_v25  ;;  %v138_v14 = vmul.f32 %v134_v6, %v649_v26  ;;  %v98_v49 = vmul.f32 %v94_v38, %v649_v26  ;;  %v99_v51 = vmul.f32 %v95_v41, %v653_v27 }
  0x27   :  { %v140_v28 = vadd.f32 -13.280682, %v136_v11  ;;  %v139_v36 = vmul.f32 %v135_v12, %v653_v27  ;;  %v100_v52 = vadd.f32 -30.664799, %v96_v42  ;;  %v101_v53 = vadd.f32 -30.664799, %v97_v43 }
  0x28   :  { %v141_v30 = vadd.f32 -13.280682, %v137_v13  ;;  %v142_v35 = vadd.f32 -13.280682, %v138_v14  ;;  %v225_v57 = vmul.f32 0.6931472, %v486_v40 }
  0x29   :  { %v144_v37 = vmul.f32 %v140_v28, %v641_v24  ;;  %v143_v46 = vadd.f32 -13.280682, %v139_v36  ;;  %v227_v58 = vmul.f32 0.6931472, %v488_v45  ;;  %v229_v59 = vmul.f32 0.6931472, %v490_v48 }
  0x2a   :  { %v145_v39 = vmul.f32 %v141_v30, %v645_v25  ;;  %v146_v44 = vmul.f32 %v142_v35, %v649_v26  ;;  %v492_v55 = vpop.eup %491  ;;  %v102_v60 = vadd.f32 -30.664799, %v98_v49  ;;  %v719_v61 = vmul.f32 -2.0, %v225_v57 }
  0x2b   :  { %v708_v47 = vadd.f32 1.0, %v144_v37  ;;  %v147_v56 = vmul.f32 %v143_v46, %v653_v27  ;;  %v103_v62 = vadd.f32 -30.664799, %v99_v51  ;;  %v231_v63 = vmul.f32 0.6931472, %v492_v55 }
  0x2c   :  { %v711_v50 = vadd.f32 1.0, %v145_v39  ;;  %v714_v54 = vadd.f32 1.0, %v146_v44  ;;  %v722_v0 = vmul.f32 -2.0, %v227_v58  ;;  %v104_v1 = vmul.f32 %v100_v52, %v641_v24 }
  0x2d   :  { %493 = vrcp.f32 %v708_v47  ;;  %v105_v2 = vmul.f32 %v101_v53, %v645_v25  ;;  %v726_v4 = vadd.f32 1.0, %v147_v56  ;;  %v729_v5 = vmul.f32 -2.0, %v229_v59 }
  0x2e   :  { %495 = vrcp.f32 %v711_v50  ;;  %v106_v8 = vmul.f32 %v102_v60, %v649_v26  ;;  %v734_v9 = vmul.f32 -2.0, %v231_v63  ;;  %v107_v24 = vmul.f32 %v103_v62, %v653_v27 }
  0x2f   :  { %497 = vrcp.f32 %v714_v54  ;;  %v108_v11 = vadd.f32 2.5066283, %v104_v1  ;;  %v109_v25 = vadd.f32 2.5066283, %v105_v2  ;;  %v167_v28 = vand.u32 2147483648, %v708_v47 }
  0x30   :  { %499 = vrsqrt.f32 %v719_v61  ;;  %v746_v14 = vadd.f32 2.5066283, %v106_v8  ;;  %v182_v29 = vand.u32 2147483648, %v711_v50  ;;  %v197_v30 = vand.u32 2147483648, %v714_v54 }
  0x31   :  { %501 = vrsqrt.f32 %v722_v0  ;;  %v755_v33 = vadd.f32 2.5066283, %v107_v24  ;;  %v758_v34 = vmul.f32 %v628_v20, %v108_v11  ;;  %v761_v35 = vmul.f32 %v631_v21, %v109_v25 }
  0x32   :  { %503 = vrcp.f32 %v726_v4  ;;  %v165_v36 = vand.u32 2147483647, %v708_v47  ;;  %v180_v39 = vand.u32 2147483647, %v711_v50  ;;  %v769_v43 = vor.u32 1.1754944e-38, %v167_v28 }
  0x33   :  { %v731_v6 = vpop.eup %493  ;;  %505 = vrsqrt.f32 %v729_v5  ;;  %v771_v44 = vor.u32 1.1754944e-38, %v182_v29  ;;  %v195_v20 = vand.u32 2147483647, %v714_v54  ;;  %vm161_vm0 = vweird.f32 %v708_v47 }
  0x34   :  { %v737_v10 = vpop.eup %495  ;;  %v157_v13 = vmul.f32 %v731_v6, %v708_v47  ;;  %507 = vrsqrt.f32 %v734_v9  ;;  %v776_v48 = vor.u32 1.1754944e-38, %v197_v30  ;;  %v212_v49 = vand.u32 2147483648, %v726_v4 }
  0x35   :  { %v741_v12 = vpop.eup %497  ;;  %v172_v27 = vmul.f32 %v737_v10, %v711_v50  ;;  %vm162_vm1 = vweird.f32 %v731_v6  ;;  %vm243_vm2 = vcmp.eq.f32.partialorder %v719_v61, inf  ;;  %vm245_vm3 = vcmp.eq.f32.partialorder %v719_v61, 0.0 }
  0x36   :  { %v500_v26 = vpop.eup %499  ;;  %v158_v38 = vsub.f32 1.0, %v157_v13  ;;  %v187_v40 = vmul.f32 %v741_v12, %v714_v54  ;;  %v246_v8 = vand.u32 2147483648, %v719_v61  ;;  %vm255_vm4 = vcmp.eq.f32.partialorder %v722_v0, inf  ;;  %vm823_vm9 = vmor %vm161_vm0, %vm162_vm1 }
  0x37   :  { %v237_v32 = vmul.f32 %v500_v26, %v719_v61  ;;  %v502_v37 = vpop.eup %501  ;;  %v173_v46 = vsub.f32 1.0, %v172_v27  ;;  %vm257_vm5 = vcmp.eq.f32.partialorder %v722_v0, 0.0  ;;  %v258_v30 = vand.u32 2147483648, %v722_v0 }
  0x38   :  { %v767_v42 = vpop.eup %503  ;;  %v249_v21 = vmul.f32 %v502_v37, %v722_v0  ;;  %v159_v56 = vmul.f32 %v731_v6, %v158_v38  ;;  %v188_v57 = vsub.f32 1.0, %v187_v40  ;;  %vm267_vm6 = vcmp.eq.f32.partialorder %v729_v5, inf }
  0x39   :  { %v238_v41 = vmul.f32 %v500_v26, %v237_v32  ;;  %v506_v45 = vpop.eup %505  ;;  %v785_v58 = vmul.f32 %v767_v42, %v726_v4  ;;  %v174_v1 = vmul.f32 %v737_v10, %v173_v46  ;;  %vm269_vm7 = vcmp.eq.f32.partialorder %v729_v5, 0.0 }
  0x3a   :  { %v250_v52 = vmul.f32 %v502_v37, %v249_v21  ;;  %v261_v53 = vmul.f32 %v506_v45, %v729_v5  ;;  %v508_v55 = vpop.eup %507  ;;  %v794_v13 = vadd.f32 %v731_v6, %v159_v56  ;;  %v797_v28 = vmul.f32 %v741_v12, %v188_v57 }
  0x3b   :  { %v239_v51 = vmul.f32 0.5, %v238_v41  ;;  %v273_v63 = vmul.f32 %v508_v55, %v734_v9  ;;  %v203_v29 = vsub.f32 1.0, %v785_v58  ;;  %v803_v40 = vadd.f32 %v737_v10, %v174_v1 }
  0x3c   :  { %v251_v60 = vmul.f32 0.5, %v250_v52  ;;  %v262_v62 = vmul.f32 %v506_v45, %v261_v53  ;;  %v270_v52 = vand.u32 2147483648, %v729_v5  ;;  %vm279_vm8 = vcmp.eq.f32.partialorder %v734_v9, inf }
  0x3d   :  { %v240_v59 = vsub.f32 1.5, %v239_v51  ;;  %v274_v25 = vmul.f32 %v508_v55, %v273_v63  ;;  %vm281_vm10 = vcmp.eq.f32.partialorder %v734_v9, 0.0  ;;  %vm176_vm11 = vweird.f32 %v711_v50 }
  0x3e   :  { %v252_v24 = vsub.f32 1.5, %v251_v60  ;;  %v263_v11 = vmul.f32 0.5, %v262_v62  ;;  %vm177_vm12 = vweird.f32 %v737_v10  ;;  %v282_v62 = vand.u32 2147483648, %v734_v9 }
  0x3f   :  { %v241_v2 = vmul.f32 %v500_v26, %v240_v59  ;;  %v275_v38 = vmul.f32 0.5, %v274_v25  ;;  %vm191_vm13 = vweird.f32 %v714_v54  ;;  %vm192_vm14 = vweird.f32 %v741_v12 }
  0x40   :  { %v253_v26 = vmul.f32 %v502_v37, %v252_v24  ;;  %v264_v32 = vsub.f32 1.5, %v263_v11  ;;  %vm868_vm15 = vcmp.eq.f32.partialorder %v165_v36, 8.507059e+37  ;;  %vm877_vm0 = vcmp.eq.f32.partialorder %v180_v39, 8.507059e+37 }
  0x41   :  { %v242_v27 = vmul.f32 %v241_v2, %v719_v61  ;;  %v276_v51 = vsub.f32 1.5, %v275_v38  ;;  %vm893_vm1 = vcmp.eq.f32.partialorder %v195_v20, 8.507059e+37 }
  0x42   :  { %v254_v37 = vmul.f32 %v253_v26, %v722_v0  ;;  %v265_v46 = vmul.f32 %v506_v45, %v264_v32 }
  0x43   :  { %v244_v41 = vsel %vm243_vm2, %v719_v61, %v242_v27  ;;  %v277_v59 = vmul.f32 %v508_v55, %v276_v51  ;;  %vm206_vm2 = vweird.f32 %v726_v4 }
  0x44   :  { %v812_v21 = vsel %vm245_vm3, %v246_v8, %v244_v41  ;;  %v256_v45 = vsel %vm255_vm4, %v722_v0, %v254_v37  ;;  %v266_v57 = vmul.f32 %v265_v46, %v729_v5  ;;  %v164_v0 = vsel %vm823_vm9, %v731_v6, %v794_v13  ;;  %vm905_vm4 = vmor %vm176_vm11, %vm177_vm12 }
  0x45   :  { %v284_v53 = vmul.f32 -0.007784894, %v812_v21  ;;  %v324_v56 = vmul.f32 0.007784696, %v812_v21  ;;  %v836_v60 = vsel %vm257_vm5, %v258_v30, %v256_v45  ;;  %v278_v55 = vmul.f32 %v277_v59, %v734_v9  ;;  %vm924_vm5 = vmor %vm191_vm13, %vm192_vm14 }
  0x46   :  { %v268_v2 = vsel %vm267_vm6, %v729_v5, %v266_v57  ;;  %v285_v8 = vmul.f32 -0.007784894, %v836_v60  ;;  %v325_v24 = vmul.f32 0.007784696, %v836_v60  ;;  %vm207_vm3 = vweird.f32 %v767_v42 }
  0x47   :  { %v288_v63 = vadd.f32 -0.32239646, %v284_v53  ;;  %v328_v1 = vadd.f32 0.32246712, %v324_v56  ;;  %v851_v11 = vsel %vm269_vm7, %v270_v52, %v268_v2  ;;  %v280_v26 = vsel %vm279_vm8, %v734_v9, %v278_v55  ;;  %vm981_vm6 = vmor %vm206_vm2, %vm207_vm3 }
  0x48   :  { %v286_v30 = vmul.f32 -0.007784894, %v851_v11  ;;  %v289_v32 = vadd.f32 -0.32239646, %v285_v8  ;;  %v326_v38 = vmul.f32 0.007784696, %v851_v11  ;;  %v864_v5 = vsel %vm281_vm10, %v282_v62, %v280_v26 }
  0x49   :  { %v292_v25 = vmul.f32 %v288_v63, %v812_v21  ;;  %v332_v27 = vmul.f32 %v328_v1, %v812_v21  ;;  %v329_v37 = vadd.f32 0.32246712, %v325_v24  ;;  %v287_v52 = vmul.f32 -0.007784894, %v864_v5 }
  0x4a   :  { %v290_v53 = vadd.f32 -0.32239646, %v286_v30  ;;  %v293_v56 = vmul.f32 %v289_v32, %v836_v60  ;;  %v327_v45 = vmul.f32 0.007784696, %v864_v5  ;;  %v330_v47 = vadd.f32 0.32246712, %v326_v38 }
  0x4b   :  { %v296_v41 = vadd.f32 -2.4007583, %v292_v25  ;;  %v336_v46 = vadd.f32 2.4451342, %v332_v27  ;;  %v333_v36 = vmul.f32 %v329_v37, %v836_v60  ;;  %v291_v62 = vadd.f32 -0.32239646, %v287_v52 }
  0x4c   :  { %v294_v63 = vmul.f32 %v290_v53, %v851_v11  ;;  %v297_v1 = vadd.f32 -2.4007583, %v293_v56  ;;  %v331_v2 = vadd.f32 0.32246712, %v327_v45  ;;  %v334_v8 = vmul.f32 %v330_v47, %v851_v11 }
  0x4d   :  { %v300_v57 = vmul.f32 %v296_v41, %v812_v21  ;;  %v340_v59 = vmul.f32 %v336_v46, %v812_v21  ;;  %v337_v24 = vadd.f32 2.4451342, %v333_v36  ;;  %v295_v25 = vmul.f32 %v291_v62, %v864_v5 }
  0x4e   :  { %v298_v27 = vadd.f32 -2.4007583, %v294_v63  ;;  %v301_v26 = vmul.f32 %v297_v1, %v836_v60  ;;  %v335_v30 = vmul.f32 %v331_v2, %v864_v5  ;;  %v190_v32 = vadd.f32 %v741_v12, %v797_v28 }
  0x4f   :  { %v304_v55 = vadd.f32 -2.5497324, %v300_v57  ;;  %v344_v39 = vadd.f32 3.7544086, %v340_v59  ;;  %v338_v41 = vadd.f32 2.4451342, %v334_v8  ;;  %v341_v37 = vmul.f32 %v337_v24, %v836_v60 }
  0x50   :  { %v299_v20 = vadd.f32 -2.4007583, %v295_v25  ;;  %v302_v52 = vmul.f32 %v298_v27, %v851_v11  ;;  %v305_v53 = vadd.f32 -2.5497324, %v301_v26  ;;  %v339_v56 = vadd.f32 2.4451342, %v335_v30 }
  0x51   :  { %v348_v46 = vmul.f32 %v344_v39, %v812_v21  ;;  %v308_v45 = vmul.f32 %v304_v55, %v812_v21  ;;  %v342_v57 = vmul.f32 %v338_v41, %v851_v11  ;;  %v345_v47 = vadd.f32 3.7544086, %v341_v37 }
  0x52   :  { %v303_v59 = vmul.f32 %v299_v20, %v864_v5  ;;  %v306_v62 = vadd.f32 -2.5497324, %v302_v52  ;;  %v309_v50 = vmul.f32 %v305_v53, %v836_v60  ;;  %v343_v63 = vmul.f32 %v339_v56, %v864_v5 }
  0x53   :  { %v352_v36 = vadd.f32 1.0, %v348_v46  ;;  %v179_v1 = vsel %vm905_vm4, %v737_v10, %v803_v40  ;;  %v346_v2 = vadd.f32 3.7544086, %v342_v57  ;;  %v349_v8 = vmul.f32 %v345_v47, %v836_v60 }
  0x54   :  { %v204_v24 = vmul.f32 %v767_v42, %v203_v29  ;;  %v307_v39 = vadd.f32 -2.5497324, %v303_v59  ;;  %v310_v25 = vmul.f32 %v306_v62, %v851_v11  ;;  %v347_v10 = vadd.f32 3.7544086, %v343_v63 }
  0x55   :  { %509 = vrcp.f32 %v352_v36  ;;  %v169_v54 = vsel %vm868_vm15, %v769_v43, %v164_v0  ;;  %v312_v40 = vadd.f32 4.3746643, %v308_v45  ;;  %v350_v27 = vmul.f32 %v346_v2, %v851_v11 }
  0x56   :  { %v353_v26 = vadd.f32 1.0, %v349_v8  ;;  %v184_v58 = vsel %vm877_vm0, %v771_v44, %v179_v1  ;;  %v311_v29 = vmul.f32 %v307_v39, %v864_v5  ;;  %v313_v30 = vadd.f32 4.3746643, %v309_v50 }
  0x57   :  { %v351_v61 = vmul.f32 %v347_v10, %v864_v5  ;;  %v194_v6 = vsel %vm924_vm5, %v741_v12, %v190_v32  ;;  %v314_v13 = vadd.f32 4.3746643, %v310_v25  ;;  %v949_v51 = vadd.f32 1.0, %v350_v27 }
  0x58   :  { %511 = vrcp.f32 %v353_v26  ;;  %v953_v43 = vmul.f32 %v634_v22, %v746_v14  ;;  %v956_v0 = vmul.f32 %v169_v54, %v758_v34  ;;  %v210_v44 = vand.u32 2147483647, %v726_v4 }
  0x59   :  { %v961_v9 = vor.u32 1.1754944e-38, %v212_v49  ;;  %v964_v12 = vadd.f32 %v767_v42, %v204_v24  ;;  %v315_v32 = vadd.f32 4.3746643, %v311_v29  ;;  %v316_v37 = vmul.f32 %v312_v40, %v812_v21 }
  0x5a   :  { %v967_v46 = vadd.f32 1.0, %v351_v61  ;;  %v970_v22 = vmul.f32 %v184_v58, %v761_v35  ;;  %v975_v14 = vsel %vm893_vm1, %v776_v48, %v194_v6  ;;  %v317_v49 = vmul.f32 %v313_v30, %v836_v60 }
  0x5b   :  { %v510_v41 = vpop.eup %509  ;;  %v318_v28 = vmul.f32 %v314_v13, %v851_v11  ;;  %v365_v35 = vand.u32 2147483647, %v352_v36  ;;  %v367_v20 = vand.u32 2147483648, %v352_v36  ;;  %513 = vrcp.f32 %v949_v51 }
  0x5c   :  { %v357_v21 = vmul.f32 %v510_v41, %v352_v36  ;;  %vm361_vm7 = vweird.f32 %v352_v36  ;;  %vm362_vm8 = vweird.f32 %v510_v41  ;;  %v380_v48 = vand.u32 2147483647, %v353_v26 }
  0x5d   :  { %v209_v4 = vsel %vm981_vm6, %v767_v42, %v964_v12  ;;  %v319_v53 = vmul.f32 %v315_v32, %v864_v5  ;;  %v320_v60 = vadd.f32 2.938164, %v316_v37  ;;  %515 = vrcp.f32 %v967_v46  ;;  %vm994_vm9 = vmor %vm361_vm7, %vm362_vm8 }
  0x5e   :  { %v358_v38 = vsub.f32 1.0, %v357_v21  ;;  %v512_v52 = vpop.eup %511  ;;  %v321_v11 = vadd.f32 2.938164, %v317_v49  ;;  %v382_v57 = vand.u32 2147483648, %v353_v26  ;;  %v322_v47 = vadd.f32 2.938164, %v318_v28 }
  0x5f   :  { %v372_v45 = vmul.f32 %v512_v52, %v353_v26  ;;  %vm998_vm10 = vcmp.eq.f32.partialorder %v365_v35, 8.507059e+37  ;;  %v368_v62 = vor.u32 1.1754944e-38, %v367_v20  ;;  %vm376_vm11 = vweird.f32 %v353_v26 }
  0x60   :  { %v359_v56 = vmul.f32 %v510_v41, %v358_v38  ;;  %vm1002_vm12 = vcmp.eq.f32.partialorder %v210_v44, 8.507059e+37  ;;  %vm377_vm13 = vweird.f32 %v512_v52  ;;  %vm1006_vm14 = vcmp.eq.f32.partialorder %v380_v48, 8.507059e+37 }
  0x61   :  { %v373_v63 = vsub.f32 1.0, %v372_v45  ;;  %v514_v2 = vpop.eup %513  ;;  %v323_v8 = vadd.f32 2.938164, %v319_v53  ;;  %vm391_vm15 = vweird.f32 %v949_v51  ;;  %v395_v55 = vand.u32 2147483647, %v949_v51  ;;  %vm1019_vm0 = vmor %vm376_vm11, %vm377_vm13 }
  0x62   :  { %v360_v50 = vadd.f32 %v510_v41, %v359_v56  ;;  %v397_v24 = vand.u32 2147483648, %v949_v51  ;;  %v383_v10 = vor.u32 1.1754944e-38, %v382_v57  ;;  %v387_v54 = vmul.f32 %v514_v2, %v949_v51 }
  0x63   :  { %v374_v25 = vmul.f32 %v512_v52, %v373_v63  ;;  %v516_v40 = vpop.eup %515  ;;  %vm392_vm1 = vweird.f32 %v514_v2  ;;  %vm406_vm2 = vweird.f32 %v967_v46  ;;  %v410_v29 = vand.u32 2147483647, %v967_v46 }
  0x64   :  { %v364_v39 = vsel %vm994_vm9, %v510_v41, %v360_v50  ;;  %v388_v6 = vsub.f32 1.0, %v387_v54  ;;  %v402_v13 = vmul.f32 %v516_v40, %v967_v46  ;;  %vm407_vm3 = vweird.f32 %v516_v40  ;;  %vm1036_vm7 = vmor %vm391_vm15, %vm392_vm1 }
  0x65   :  { %v369_v27 = vsel %vm998_vm10, %v368_v62, %v364_v39  ;;  %v375_v61 = vadd.f32 %v512_v52, %v374_v25  ;;  %v412_v44 = vand.u32 2147483648, %v967_v46  ;;  %vm416_vm4 = vcmp.gt.f32.partialorder %v619_v16, 0.5  ;;  %vm1051_vm10 = vmor %vm406_vm2, %vm407_vm3 }
  0x66   :  { %v370_v30 = vmul.f32 %v369_v27, %v320_v60  ;;  %vm428_vm5 = vcmp.lt.f32.partialorder %v680_v3, 0.02425  ;;  %v389_v41 = vmul.f32 %v514_v2, %v388_v6  ;;  %v403_v32 = vsub.f32 1.0, %v402_v13 }
  0x67   :  { %v379_v26 = vsel %vm1019_vm0, %v512_v52, %v375_v61  ;;  %vm1040_vm8 = vcmp.eq.f32.partialorder %v395_v55, 8.507059e+37  ;;  %v398_v28 = vor.u32 1.1754944e-38, %v397_v24  ;;  %vm1044_vm9 = vcmp.eq.f32.partialorder %v410_v29, 8.507059e+37  ;;  %v439_v24 = vld [vmem:[#allocation2 + $0x18] sm:$0xff] }
  0x68   :  { %v420_v37 = vsub.f32 0.0, %v370_v30  ;;  %v384_v49 = vsel %vm1006_vm14, %v383_v10, %v379_v26  ;;  %v390_v38 = vadd.f32 %v514_v2, %v389_v41  ;;  %v404_v48 = vmul.f32 %v516_v40, %v403_v32 }
  0x69   :  { %v385_v20 = vmul.f32 %v384_v49, %v321_v11  ;;  %v413_v53 = vor.u32 1.1754944e-38, %v412_v44  ;;  %vm417_vm11 = vcmp.gt.f32.partialorder %v621_v17, 0.5  ;;  %vm429_vm13 = vcmp.lt.f32.partialorder %v683_v7, 0.02425 }
  0x6a   :  { %v424_v52 = vsel %vm416_vm4, %v420_v37, %v370_v30  ;;  %v394_v11 = vsel %vm1036_vm7, %v514_v2, %v390_v38  ;;  %v405_v56 = vadd.f32 %v516_v40, %v404_v48  ;;  %v155_v46 = vmul.f32 %v637_v23, %v755_v33 }
  0x6b   :  { %v432_v60 = vsel %vm428_vm5, %v424_v52, %v956_v0  ;;  %v421_v45 = vsub.f32 0.0, %v385_v20  ;;  %v200_v36 = vmul.f32 %v975_v14, %v953_v43  ;;  %v214_v17 = vsel %vm1002_vm12, %v961_v9, %v209_v4  ;;  %v436_v0 = vld [vmem:[#allocation2] sm:$0xff] }
  0x6c   :  { %v440_v57 = vmul.f32 0.1, %v432_v60  ;;  %v399_v3 = vsel %vm1040_vm8, %v398_v28, %v394_v11  ;;  %v409_v23 = vsel %vm1051_vm10, %v516_v40, %v405_v56  ;;  %vm418_vm14 = vcmp.gt.f32.partialorder %v623_v18, 0.5 }
  0x6d   :  { %v400_v59 = vmul.f32 %v399_v3, %v322_v47  ;;  %v425_v33 = vsel %vm417_vm11, %v421_v45, %v385_v20  ;;  %v414_v43 = vsel %vm1044_vm9, %v413_v53, %v409_v23  ;;  %vm430_vm6 = vcmp.lt.f32.partialorder %v691_v15, 0.02425  ;;  %v437_v47 = vld [vmem:[#allocation2 + $0x8] sm:$0xff] }
  0x6e   :  { %v444_v62 = vadd.f32 1.0, %v440_v57  ;;  %v433_v42 = vsel %vm429_vm13, %v425_v33, %v970_v22  ;;  %v415_v9 = vmul.f32 %v414_v43, %v323_v8  ;;  %v215_v4 = vmul.f32 %v214_v17, %v155_v46  ;;  %v438_v22 = vld [vmem:[#allocation2 + $0x10] sm:$0xff] }
  0x6f   :  { %v422_v12 = vsub.f32 0.0, %v400_v59  ;;  %v441_v14 = vmul.f32 0.1, %v433_v42  ;;  %vm419_vm12 = vcmp.gt.f32.partialorder %v625_v19, 0.5  ;;  %vm431_vm15 = vcmp.lt.f32.partialorder %v696_v31, 0.02425 }
  0x70   :  { %v448_v34 = vmul.f32 %v444_v62, %v436_v0  ;;  %v423_v5 = vsub.f32 0.0, %v415_v9 }
  0x71   :  { %v426_v50 = vsel %vm418_vm14, %v422_v12, %v400_v59  ;;  %v445_v63 = vadd.f32 1.0, %v441_v14 }
  0x72   :  { %452 = vst [vmem:[#allocation7] sm:$0xff] %v448_v34  ;;  %v434_v18 = vsel %vm430_vm6, %v426_v50, %v200_v36  ;;  %v427_v15 = vsel %vm419_vm12, %v423_v5, %v415_v9 }
  0x73   :  { %v442_v1 = vmul.f32 0.1, %v434_v18  ;;  %v449_v2 = vmul.f32 %v445_v63, %v437_v47  ;;  %v435_v7 = vsel %vm431_vm15, %v427_v15, %v215_v4 }
  0x74   :  { %v443_v8 = vmul.f32 0.1, %v435_v7 }
  0x75   :  { %v446_v55 = vadd.f32 1.0, %v442_v1  ;;  %453 = vst [vmem:[#allocation7 + $0x8] sm:$0xff] %v449_v2 }
  0x76   :  { %v447_v19 = vadd.f32 1.0, %v443_v8 }
  0x77   :  { %v450_v31 = vmul.f32 %v446_v55, %v438_v22 }
  0x78   :  { %v451_v39 = vmul.f32 %v447_v19, %v439_v24 }
  0x79   :  { %454 = vst [vmem:[#allocation7 + $0x10] sm:$0xff] %v450_v31 }
  0x7a   :  { %455 = vst [vmem:[#allocation7 + $0x18] sm:$0xff] %v451_v39 }
  0x7b   :  { %466 = dma.vmem_to_hbm [thread:$0]  %s462_s1, 512, %s464_s21, [#allocation4]  }
  0x7c   :  { %593 = dma.done.wait [#allocation4], 512  }
  0x7d   :  { %594 = vsyncadd [#allocation4], 4294966784 }
  0x7e   :  { %471 = vsyncpa [#allocation3], 1 }
  0x7f   :  { %472 = vsyncpa [#allocation6], 1 }
  0x80   :  { %473 = vsyncpa [#allocation4], 1 }

</bundles_post_ra>
